<compile_context>
chip_gen: v6e
topology: v6e:2x2x1
jax: 0.10.0
libtpu: 0.0.40
codegen_flags: <defaults>
</compile_context>

<pallas_src>
import jax
import jax.numpy as jnp
import numpy as np
from jax.experimental import pallas as pl
from jax.experimental.pallas import tpu as pltpu

IN_FEATS = 1433
HIDDEN = 16
OUT_FEATS = 7

HIGHEST = jax.lax.Precision.HIGHEST


def fused_gcn_kernel(a_ref, x_ref, w1t_ref, b1_ref, w2t_ref, b2_ref, o_ref):
    """relu(A @ (X @ W1^T) + b1) -> relu(A @ (H1 @ W2^T) + b2), fully fused."""
    a = a_ref[...]                                            # [N, N] f32

    # ---- Layer 1 ----
    # bf16 x bf16 on the MXU, f32 accumulation (K = 1433 reduction).
    xw1 = jnp.dot(x_ref[...], w1t_ref[...],
                  preferred_element_type=jnp.float32)         # [N, 16]
    # Graph aggregation in full f32 (adjacency is exact {0,1}).
    h1 = jnp.dot(a, xw1, preferred_element_type=jnp.float32,
                 precision=HIGHEST)                           # [N, 16]
    h1 = jnp.maximum(h1 + b1_ref[...], 0.0)

    # ---- Layer 2 (tiny, full f32) ----
    hw2 = jnp.dot(h1, w2t_ref[...], preferred_element_type=jnp.float32,
                  precision=HIGHEST)                          # [N, 7]
    z2 = jnp.dot(a, hw2, preferred_element_type=jnp.float32,
                 precision=HIGHEST) + b2_ref[...]
    o_ref[...] = jnp.maximum(z2, 0.0).astype(o_ref.dtype)     # [N, 7]


def net_forward(adj, features, prepared):
    """Full Net forward.

    adj:      [N, N] float32 dense adjacency (A[v, u] = 1 iff edge u -> v).
    features: [N, 1433], preferably already bf16 (cast at the call boundary,
              outside jit, so no per-call convert lands on the dispatch path).
    prepared: output of prepare_params() (one-time repack, outside jit).
    Returns logits [N, 7] float32.
    """
    w1t, b1, w2t, b2 = prepared
    n, in_feats = features.shape
    hidden = w1t.shape[1]
    out_feats = w2t.shape[1]

    # Defensive casts: no-ops when the caller already supplies these dtypes.
    features = features.astype(jnp.bfloat16)
    adj = adj.astype(jnp.float32)

    cost = pl.CostEstimate(
        flops=2 * n * (in_feats * hidden + n * hidden
                       + hidden * out_feats + n * out_feats),
        transcendentals=0,
        bytes_accessed=(4 * n * n                 # adj f32
                        + 2 * n * in_feats        # features bf16
                        + 2 * in_feats * hidden   # W1^T bf16
                        + 4 * hidden              # b1 f32
                        + 4 * hidden * out_feats  # W2^T f32
                        + 4 * out_feats           # b2 f32
                        + 4 * n * out_feats),     # output f32
    )

    vmem = pl.BlockSpec(memory_space=pltpu.MemorySpace.VMEM)
    return pl.pallas_call(
        fused_gcn_kernel,
        out_shape=jax.ShapeDtypeStruct((n, out_feats), jnp.float32),
        in_specs=[vmem] * 6,
        out_specs=vmem,
        cost_estimate=cost,
    )(adj, features, w1t, b1, w2t, b2)


def init_params(key, in_feats=IN_FEATS, hidden=HIDDEN, out_feats=OUT_FEATS):
    """Deterministic torch.nn.Linear-style init (uniform +/- 1/sqrt(fan_in))."""
    k1, k2, k3, k4 = jax.random.split(key, 4)
    bound1 = 1.0 / jnp.sqrt(in_feats)
    bound2 = 1.0 / jnp.sqrt(hidden)
    w1 = jax.random.uniform(k1, (hidden, in_feats), jnp.float32, -bound1, bound1)
    b1 = jax.random.uniform(k2, (hidden,), jnp.float32, -bound1, bound1)
    w2 = jax.random.uniform(k3, (out_feats, hidden), jnp.float32, -bound2, bound2)
    b2 = jax.random.uniform(k4, (out_feats,), jnp.float32, -bound2, bound2)
    return (w1, b1, w2, b2)


def prepare_params(params):
    """One-time repack (call OUTSIDE jit): pre-transpose, cast the big
    first-layer weight to bf16, make biases 2-D rows.  No lane padding, so the
    per-call weight DMA stays at its minimal compact size."""
    w1, b1, w2, b2 = params
    return (
        jnp.asarray(w1.T, dtype=jnp.bfloat16),                 # [1433, 16]
        jnp.asarray(b1, dtype=jnp.float32).reshape(1, -1),     # [1, 16]
        jnp.asarray(w2.T, dtype=jnp.float32),                  # [16, 7]
        jnp.asarray(b2, dtype=jnp.float32).reshape(1, -1),     # [1, 7]
    )


if __name__ == "__main__":
    key = jax.random.PRNGKey(0)
    k_feat, k_adj, k_param = jax.random.split(key, 3)

    N = 32           # number of graph nodes (small synthetic graph)

    features_f32 = jax.random.normal(k_feat, (N, IN_FEATS), dtype=jnp.float32)
    # Synthetic directed graph: dense adjacency, A[v, u] = 1 iff edge u -> v.
    # TODO(synk): sparse (edge-list / segment-sum) message passing is not
    # implemented; the graph is densified to an adjacency matmul.
    adj = (jax.random.uniform(k_adj, (N, N)) < 0.2).astype(jnp.float32)

    params = init_params(k_param)
    prepared = prepare_params(params)                 # one-time, outside jit
    features = features_f32.astype(jnp.bfloat16)      # one-time cast, outside jit

    fwd = jax.jit(net_forward)
    out = fwd(adj, features, prepared)
    jax.block_until_ready(out)

    # ---- Correctness checks (numpy f32, independent of TPU matmul defaults) ----
    w1, b1, w2, b2 = (np.asarray(p, dtype=np.float32) for p in params)
    a_np = np.asarray(adj, dtype=np.float32)
    out_np = np.asarray(out)
    assert out.shape == (N, OUT_FEATS)

    # (1) Tight check against the exact math the kernel performs: the same
    #     bf16-quantized X / W1^T, full-f32 accumulation / aggregation.
    xq = np.asarray(features).astype(np.float32)          # bf16 -> f32
    w1tq = np.asarray(prepared[0]).astype(np.float32)     # bf16 -> f32
    ref_q = np.maximum(a_np @ (xq @ w1tq) + b1, 0.0)
    ref_q = np.maximum(a_np @ (ref_q @ w2.T) + b2, 0.0)
    assert np.allclose(out_np, ref_q, atol=1e-3, rtol=1e-3)

    # (2) Loose check against the original full-f32 module semantics; the only
    #     gap is the explicit bf16 quantization of the inputs.
    x_np = np.asarray(features_f32)
    ref = np.maximum(a_np @ x_np @ w1.T + b1, 0.0)
    ref = np.maximum(a_np @ ref @ w2.T + b2, 0.0)
    assert np.allclose(out_np, ref, atol=5e-2, rtol=5e-2)

    print("KERNEL_OK")
</pallas_src>

<mosaic_0001>
module attributes {stable_mosaic.version = 11 : i64} {
  func.func @fused_gcn_kernel(%arg0: memref<32x32xf32, #tpu.memory_space<vmem>>, %arg1: memref<32x1433xbf16, #tpu.memory_space<vmem>>, %arg2: memref<1433x16xbf16, #tpu.memory_space<vmem>>, %arg3: memref<1x16xf32, #tpu.memory_space<vmem>>, %arg4: memref<16x7xf32, #tpu.memory_space<vmem>>, %arg5: memref<1x7xf32, #tpu.memory_space<vmem>>, %arg6: memref<32x7xf32, #tpu.memory_space<vmem>>) attributes {dimension_semantics = [], scalar_prefetch = 0 : i64, scratch_operands = 0 : i64, tpu.core_type = #tpu.core_type<tc>} {
    %c0 = arith.constant 0 : index
    %c0_0 = arith.constant 0 : index
    %0 = vector.load %arg0[%c0, %c0_0] : memref<32x32xf32, #tpu.memory_space<vmem>>, vector<32x32xf32>
    %c0_1 = arith.constant 0 : index
    %c0_2 = arith.constant 0 : index
    %1 = vector.load %arg1[%c0_1, %c0_2] : memref<32x1433xbf16, #tpu.memory_space<vmem>>, vector<32x1433xbf16>
    %c0_3 = arith.constant 0 : index
    %c0_4 = arith.constant 0 : index
    %2 = vector.load %arg2[%c0_3, %c0_4] : memref<1433x16xbf16, #tpu.memory_space<vmem>>, vector<1433x16xbf16>
    %cst = arith.constant dense<0.000000e+00> : vector<32x16xf32>
    %3 = tpu.matmul %1, %2, %cst {dimension_numbers = #tpu.dot_dimension_numbers<[1], [0], [0], [1], [0, 0, 1, 1], [], []>} : vector<32x1433xbf16>, vector<1433x16xbf16>, vector<32x16xf32> -> vector<32x16xf32>
    %cst_5 = arith.constant dense<0.000000e+00> : vector<32x16xf32>
    %4 = tpu.matmul %0, %3, %cst_5 {dimension_numbers = #tpu.dot_dimension_numbers<[1], [0], [0], [1], [0, 0, 1, 1], [], []>, precision = #tpu.contract_precision<fp32>} : vector<32x32xf32>, vector<32x16xf32>, vector<32x16xf32> -> vector<32x16xf32>
    %c0_6 = arith.constant 0 : index
    %c0_7 = arith.constant 0 : index
    %5 = vector.load %arg3[%c0_6, %c0_7] : memref<1x16xf32, #tpu.memory_space<vmem>>, vector<1x16xf32>
    %6 = vector.broadcast %5 : vector<1x16xf32> to vector<32x16xf32>
    %7 = arith.addf %4, %6 : vector<32x16xf32>
    %cst_8 = arith.constant 0.000000e+00 : f32
    %8 = vector.broadcast %cst_8 : f32 to vector<32x16xf32>
    %9 = arith.maximumf %7, %8 : vector<32x16xf32>
    %c0_9 = arith.constant 0 : index
    %c0_10 = arith.constant 0 : index
    %10 = vector.load %arg4[%c0_9, %c0_10] : memref<16x7xf32, #tpu.memory_space<vmem>>, vector<16x7xf32>
    %cst_11 = arith.constant dense<0.000000e+00> : vector<32x7xf32>
    %11 = tpu.matmul %9, %10, %cst_11 {dimension_numbers = #tpu.dot_dimension_numbers<[1], [0], [0], [1], [0, 0, 1, 1], [], []>, precision = #tpu.contract_precision<fp32>} : vector<32x16xf32>, vector<16x7xf32>, vector<32x7xf32> -> vector<32x7xf32>
    %cst_12 = arith.constant dense<0.000000e+00> : vector<32x7xf32>
    %12 = tpu.matmul %0, %11, %cst_12 {dimension_numbers = #tpu.dot_dimension_numbers<[1], [0], [0], [1], [0, 0, 1, 1], [], []>, precision = #tpu.contract_precision<fp32>} : vector<32x32xf32>, vector<32x7xf32>, vector<32x7xf32> -> vector<32x7xf32>
    %c0_13 = arith.constant 0 : index
    %c0_14 = arith.constant 0 : index
    %13 = vector.load %arg5[%c0_13, %c0_14] : memref<1x7xf32, #tpu.memory_space<vmem>>, vector<1x7xf32>
    %14 = vector.broadcast %13 : vector<1x7xf32> to vector<32x7xf32>
    %15 = arith.addf %12, %14 : vector<32x7xf32>
    %cst_15 = arith.constant 0.000000e+00 : f32
    %16 = vector.broadcast %cst_15 : f32 to vector<32x7xf32>
    %17 = arith.maximumf %15, %16 : vector<32x7xf32>
    %c0_16 = arith.constant 0 : index
    %c0_17 = arith.constant 0 : index
    %18 = vector.load %arg6[%c0_16, %c0_17] : memref<32x7xf32, #tpu.memory_space<vmem>>, vector<32x7xf32>
    tpu.vector_store %arg6[%c0_16, %c0_17], %17 {strides = array<i32>} : memref<32x7xf32, #tpu.memory_space<vmem>>, vector<32x7xf32>,
    return
  }
}

</mosaic_0001>

<bundles_post_ra>
// kernel: net_forward.1
= control target key start
LH: loop header
LB: loop body
LE: loop exit
PB: predicated region body
PF: predicated region fallthrough
CT: control target
= control target key end

     0   :  { %vm896_vm0 = vcmask 1043456   ;;  %vm897_vm1 = vcmask 1044480   ;;  %vm889_vm2 = vcmask 203776   ;;  %vm1204_vm3 = vcmask 261120   ;;  %s4485_s2 = inlined_call_operand.vmem [shape: bf16[1433,16], index: 2, kind: input, shape index: {}]   ;;  %s4486_s1 = inlined_call_operand.vmem [shape: bf16[32,1433], index: 1, kind: input, shape index: {}]   ;;  %s4487_s0 = inlined_call_operand.vmem [shape: f32[32,32], index: 0, kind: input, shape index: {}]   ;;  %s4488_s4 = inlined_call_operand.vmem [shape: f32[16,7], index: 4, kind: input, shape index: {}]   ;;  %s4489_s3 = inlined_call_operand.vmem [shape: f32[1,16], index: 3, kind: input, shape index: {}]   ;;  %s4490_s5 = inlined_call_operand.vmem [shape: f32[1,7], index: 5, kind: input, shape index: {}]   ;;  %s4491_s6 = inlined_call_operand.vmem [shape: f32[32,7], index: 6, kind: output, shape index: {}]  }
   0x1   :  { %v3700_v0 = vld [vmem:[%s4485_s2 + $0x78] sm:$0xff]   ;;  %v3704_v4 = vld [vmem:[%s4485_s2 + $0x70] sm:$0xff]   ;;  %v3708_v8 = vld [vmem:[%s4485_s2 + $0x68] sm:$0xff]   ;;  %vm1837_vm4 = vcmask 130048   ;;  %vm3063_vm5 = vcmask 56320  }
   0x2   :  { %v3701_v1 = vld [vmem:[%s4485_s2 + $0xf8] sm:$0xff]   ;;  %3190 = vmatprep.subr.bf16.mxu0 %v3700_v0  ;;  %v3705_v5 = vld [vmem:[%s4485_s2 + $0xf0] sm:$0xff]   ;;  %v3709_v9 = vld [vmem:[%s4485_s2 + $0xe8] sm:$0xff]  }
   0x3   :  { %v3702_v2 = vld [vmem:[%s4485_s2 + $0x38] sm:$0xff]   ;;  %3218 = vmatprep.subr.bf16.mxu1 %v3701_v1  ;;  %v3706_v6 = vld [vmem:[%s4485_s2 + $0x30] sm:$0xff]   ;;  %v3710_v10 = vld [vmem:[%s4485_s2 + $0x28] sm:$0xff]  }
   0x4   :  { %v3703_v3 = vld [vmem:[%s4485_s2 + $0xb8] sm:$0xff]   ;;  %3191 = vmatpush3.bf16.msra.mxu0 %v3702_v2  ;;  %v3707_v7 = vld [vmem:[%s4485_s2 + $0xb0] sm:$0xff]   ;;  %v3711_v11 = vld [vmem:[%s4485_s2 + $0xa8] sm:$0xff]  }
   0x5   :  { %3219 = vmatpush3.bf16.msra.mxu1 %v3703_v3  ;;  %3192 = vmatprep.subr.bf16.mxu0 %v3704_v4  ;;  %v3712_v12 = vld [vmem:[%s4485_s2 + $0x60] sm:$0xff]   ;;  %v3716_v16 = vld [vmem:[%s4485_s2 + $0x58] sm:$0xff]   ;;  %v3720_v20 = vld [vmem:[%s4485_s2 + $0x50] sm:$0xff]  }
   0x6   :  { %3220 = vmatprep.subr.bf16.mxu1 %v3705_v5  ;;  %v3713_v13 = vld [vmem:[%s4485_s2 + $0xe0] sm:$0xff]   ;;  %v3717_v17 = vld [vmem:[%s4485_s2 + $0xd8] sm:$0xff]   ;;  %v3721_v21 = vld [vmem:[%s4485_s2 + $0xd0] sm:$0xff]  }
   0x7   :  { %v3714_v14 = vld [vmem:[%s4485_s2 + $0x20] sm:$0xff]   ;;  %v3718_v18 = vld [vmem:[%s4485_s2 + $0x18] sm:$0xff]   ;;  %v3722_v22 = vld [vmem:[%s4485_s2 + $0x10] sm:$0xff]  }
   0x8   :  { %3193 = vmatpush3.bf16.msra.mxu0 %v3706_v6  ;;  %v3715_v15 = vld [vmem:[%s4485_s2 + $0xa0] sm:$0xff]   ;;  %v3719_v19 = vld [vmem:[%s4485_s2 + $0x98] sm:$0xff]   ;;  %v3723_v23 = vld [vmem:[%s4485_s2 + $0x90] sm:$0xff]  }
   0x9   :  { %3221 = vmatpush3.bf16.msra.mxu1 %v3707_v7  ;;  %3194 = vmatprep.subr.bf16.mxu0 %v3708_v8  ;;  %v3724_v24 = vld [vmem:[%s4485_s2 + $0x48] sm:$0xff]   ;;  %v3728_v28 = vld [vmem:[%s4485_s2 + $0x40] sm:$0xff]   ;;  %v3738_v36 = vld [vmem:[%s4485_s2 + $0x178] sm:$0xff]  }
   0xa   :  { %3222 = vmatprep.subr.bf16.mxu1 %v3709_v9  ;;  %v3725_v25 = vld [vmem:[%s4485_s2 + $0xc8] sm:$0xff]   ;;  %v3729_v29 = vld [vmem:[%s4485_s2 + $0xc0] sm:$0xff]   ;;  %v3739_v37 = vld [vmem:[%s4485_s2 + $0x1f8] sm:$0xff]  }
   0xb   :  { %v3726_v26 = vld [vmem:[%s4485_s2 + $0x8] sm:$0xff]   ;;  %v3730_v30 = vld [vmem:[%s4485_s2] sm:$0xff]   ;;  %v3740_v38 = vld [vmem:[%s4485_s2 + $0x138] sm:$0xff]  }
   0xc   :  { %3195 = vmatpush3.bf16.msra.mxu0 %v3710_v10  ;;  %v3727_v27 = vld [vmem:[%s4485_s2 + $0x88] sm:$0xff]   ;;  %v3731_v31 = vld [vmem:[%s4485_s2 + $0x80] sm:$0xff]   ;;  %v3741_v39 = vld [vmem:[%s4485_s2 + $0x1b8] sm:$0xff]  }
   0xd   :  { %3223 = vmatpush3.bf16.msra.mxu1 %v3711_v11  ;;  %3196 = vmatprep.subr.bf16.mxu0 %v3712_v12  ;;  %v3732_v32 = vld [vmem:[%s4486_s1] ss:$48 sps:$4 sm:$0xff]   ;;  %v3734_v33 = vld [vmem:[%s4486_s1 + $0x4] ss:$48 sps:$4 sm:$0xff]   ;;  %v3735_v34 = vld [vmem:[%s4486_s1 + $0x8] ss:$48 sps:$4 sm:$0xff]  }
   0xe   :  { %3224 = vmatprep.subr.bf16.mxu1 %v3713_v13  ;;  %v3737_v35 = vld [vmem:[%s4486_s1 + $0xc] ss:$48 sps:$4 sm:$0xff]   ;;  %935 = vmatprep.mubr.bf16.mxu0 %v3734_v33  ;;  %v3742_v40 = vld [vmem:[%s4485_s2 + $0x170] sm:$0xff]   ;;  %v3750_v48 = vld [vmem:[%s4485_s2 + $0x160] sm:$0xff]   ;;  %v3826_v13 = vmov 0  }
   0xf   :  { %984 = vmatprep.mubr.bf16.mxu1 %v3737_v35  ;;  %v3743_v41 = vld [vmem:[%s4485_s2 + $0x1f0] sm:$0xff]   ;;  %v3746_v44 = vld [vmem:[%s4485_s2 + $0x168] sm:$0xff]   ;;  %v3751_v49 = vld [vmem:[%s4485_s2 + $0x1e0] sm:$0xff]  }
  0x10   :  { %3197 = vmatpush3.bf16.msra.mxu0 %v3714_v14  ;;  %v3744_v42 = vld [vmem:[%s4485_s2 + $0x130] sm:$0xff]   ;;  %v3747_v45 = vld [vmem:[%s4485_s2 + $0x1e8] sm:$0xff]   ;;  %v3752_v50 = vld [vmem:[%s4485_s2 + $0x120] sm:$0xff]  }
  0x11   :  { %3225 = vmatpush3.bf16.msra.mxu1 %v3715_v15  ;;  %3198 = vmatprep.subr.bf16.mxu0 %v3716_v16  ;;  %v3745_v43 = vld [vmem:[%s4485_s2 + $0x1b0] sm:$0xff]   ;;  %v3748_v46 = vld [vmem:[%s4485_s2 + $0x128] sm:$0xff]   ;;  %v3753_v51 = vld [vmem:[%s4485_s2 + $0x1a0] sm:$0xff]  }
  0x12   :  { %3226 = vmatprep.subr.bf16.mxu1 %v3717_v17  ;;  %v3749_v47 = vld [vmem:[%s4485_s2 + $0x1a8] sm:$0xff]   ;;  %v3754_v52 = vld [vmem:[%s4485_s2 + $0x158] sm:$0xff]   ;;  %v3758_v56 = vld [vmem:[%s4486_s1 + $0x64] ss:$48 sps:$4 sm:$0xff]  }
  0x13   :  { %v3755_v53 = vld [vmem:[%s4485_s2 + $0x1d8] sm:$0xff]   ;;  %v3762_v58 = vld [vmem:[%s4486_s1 + $0x60] ss:$48 sps:$4 sm:$0xff]   ;;  %v3768_v0 = vld [vmem:[%s4485_s2 + $0x148] sm:$0xff]  }
  0x14   :  { %3199 = vmatpush3.bf16.msra.mxu0 %v3718_v18  ;;  %v3756_v54 = vld [vmem:[%s4485_s2 + $0x118] sm:$0xff]   ;;  %v3764_v60 = vld [vmem:[%s4485_s2 + $0x150] sm:$0xff]   ;;  %v3769_v1 = vld [vmem:[%s4485_s2 + $0x1c8] sm:$0xff]  }
  0x15   :  { %3227 = vmatpush3.bf16.msra.mxu1 %v3719_v19  ;;  %3200 = vmatprep.subr.bf16.mxu0 %v3720_v20  ;;  %v3757_v55 = vld [vmem:[%s4485_s2 + $0x198] sm:$0xff]   ;;  %v3765_v61 = vld [vmem:[%s4485_s2 + $0x1d0] sm:$0xff]   ;;  %v3770_v2 = vld [vmem:[%s4485_s2 + $0x108] sm:$0xff]  }
  0x16   :  { %3228 = vmatprep.subr.bf16.mxu1 %v3721_v21  ;;  %v3760_v57 = vld [vmem:[%s4486_s1 + $0x6c] ss:$48 sps:$4 sm:$0xff]   ;;  %v3763_v59 = vld [vmem:[%s4486_s1 + $0x68] ss:$48 sps:$4 sm:$0xff]   ;;  %v3766_v62 = vld [vmem:[%s4485_s2 + $0x110] sm:$0xff]  }
  0x17   :  { %v3767_v63 = vld [vmem:[%s4485_s2 + $0x190] sm:$0xff]   ;;  %v3771_v3 = vld [vmem:[%s4485_s2 + $0x188] sm:$0xff]   ;;  %v3772_v4 = vld [vmem:[%s4485_s2 + $0x140] sm:$0xff]  }
  0x18   :  { %3201 = vmatpush3.bf16.msra.mxu0 %v3722_v22  ;;  %v3773_v5 = vld [vmem:[%s4485_s2 + $0x1c0] sm:$0xff]   ;;  %v3779_v10 = vld [vmem:[%s4486_s1 + $0x18] ss:$48 sps:$4 sm:$0xff]   ;;  %v3781_v11 = vld [vmem:[%s4486_s1 + $0x1c] ss:$48 sps:$4 sm:$0xff]  }
  0x19   :  { %3229 = vmatpush3.bf16.msra.mxu1 %v3723_v23  ;;  %3202 = vmatprep.subr.bf16.mxu0 %v3724_v24  ;;  %v3774_v6 = vld [vmem:[%s4485_s2 + $0x100] sm:$0xff]   ;;  %v3782_v12 = vld [vmem:[%s4485_s2 + $0x278] sm:$0xff]   ;;  %v3785_v16 = vld [vmem:[%s4485_s2 + $0x270] sm:$0xff]  }
  0x1a   :  { %3230 = vmatprep.subr.bf16.mxu1 %v3725_v25  ;;  %v3775_v7 = vld [vmem:[%s4485_s2 + $0x180] sm:$0xff]   ;;  %v3783_v14 = vld [vmem:[%s4485_s2 + $0x238] sm:$0xff]   ;;  %v3786_v17 = vld [vmem:[%s4485_s2 + $0x230] sm:$0xff]  }
  0x1b   :  { %v3776_v8 = vld [vmem:[%s4486_s1 + $0x10] ss:$48 sps:$4 sm:$0xff]   ;;  %v3778_v9 = vld [vmem:[%s4486_s1 + $0x14] ss:$48 sps:$4 sm:$0xff]   ;;  %v3784_v15 = vld [vmem:[%s4485_s2 + $0x2b8] sm:$0xff]  }
  0x1c   :  { %3203 = vmatpush3.bf16.msra.mxu0 %v3726_v26  ;;  %v3787_v18 = vld [vmem:[%s4485_s2 + $0x2b0] sm:$0xff]   ;;  %v3791_v21 = vld [vmem:[%s4485_s2 + $0x268] sm:$0xff]   ;;  %v3797_v26 = vld [vmem:[%s4485_s2 + $0x260] sm:$0xff]  }
  0x1d   :  { %3231 = vmatpush3.bf16.msra.mxu1 %v3727_v27  ;;  %3204 = vmatprep.subr.bf16.mxu0 %v3728_v28  ;;  %v3788_v19 = vld [vmem:[%s4486_s1 + $0x74] ss:$48 sps:$4 sm:$0xff]   ;;  %v3790_v20 = vld [vmem:[%s4486_s1 + $0x70] ss:$48 sps:$4 sm:$0xff]   ;;  %v3792_v22 = vld [vmem:[%s4486_s1 + $0x7c] ss:$48 sps:$4 sm:$0xff]  }
  0x1e   :  { %3232 = vmatprep.subr.bf16.mxu1 %v3729_v29  ;;  %v3794_v23 = vld [vmem:[%s4485_s2 + $0x228] sm:$0xff]   ;;  %v3798_v27 = vld [vmem:[%s4485_s2 + $0x220] sm:$0xff]   ;;  %v3800_v29 = vld [vmem:[%s4485_s2 + $0x258] sm:$0xff]  }
  0x1f   :  { %v3795_v24 = vld [vmem:[%s4485_s2 + $0x2a8] sm:$0xff]   ;;  %v3799_v28 = vld [vmem:[%s4485_s2 + $0x2a0] sm:$0xff]   ;;  %v3804_v33 = vld [vmem:[%s4485_s2 + $0x210] sm:$0xff]  }
  0x20   :  { %3205 = vmatpush3.bf16.msra.mxu0 %v3730_v30  ;;  %v3796_v25 = vld [vmem:[%s4486_s1 + $0x78] ss:$48 sps:$4 sm:$0xff]  }
  0x21   :  { %3233 = vmatpush3.bf16.msra.mxu1 %v3731_v31  ;;  %3246 = vmatprep.subr.bf16.mxu0 %v3738_v36  ;;  %v3801_v30 = vld [vmem:[%s4485_s2 + $0x218] sm:$0xff]   ;;  %v3806_v35 = vld [vmem:[%s4485_s2 + $0x248] sm:$0xff]  }
  0x22   :  { %3274 = vmatprep.subr.bf16.mxu1 %v3739_v37  ;;  %v3802_v31 = vld [vmem:[%s4485_s2 + $0x298] sm:$0xff]   ;;  %v3807_v36 = vld [vmem:[%s4485_s2 + $0x208] sm:$0xff]  }
  0x23   :  { %936 = vmatmul.mubr.bf16.vlgmr.msra.gmra.mxu0 %v3732_v32  ;;  %v3803_v32 = vld [vmem:[%s4485_s2 + $0x250] sm:$0xff]   ;;  %v3808_v37 = vld [vmem:[%s4485_s2 + $0x288] sm:$0xff]  }
  0x24   :  { %985 = vmatmul.mubr.bf16.vlgmr.msra.gmra.mxu1 %v3735_v34  ;;  %3247 = vmatpush3.bf16.msra.mxu0 %v3740_v38  ;;  %v3805_v34 = vld [vmem:[%s4485_s2 + $0x290] sm:$0xff]   ;;  %v3809_v38 = vld [vmem:[%s4485_s2 + $0x240] sm:$0xff]  }
  0x25   :  { %3275 = vmatpush3.bf16.msra.mxu1 %v3741_v39  ;;  %3248 = vmatprep.subr.bf16.mxu0 %v3742_v40  ;;  %v3810_v39 = vld [vmem:[%s4485_s2 + $0x200] sm:$0xff]  }
  0x26   :  { %3276 = vmatprep.subr.bf16.mxu1 %v3743_v41  ;;  %943 = vmatprep.mubr.bf16.mxu0 %v3758_v56  ;;  %v3814_v40 = vld [vmem:[%s4486_s1 + $0x24] ss:$48 sps:$4 sm:$0xff]   ;;  %v3827_v41 = vmov 65535  }
  0x27   :  { %992 = vmatprep.mubr.bf16.mxu1 %v3760_v57  ;;  %v25_v57 = vld [vmem:[%s4487_s0 + $0x8] sm:$0xff] }
  0x28   :  { %3249 = vmatpush3.bf16.msra.mxu0 %v3744_v42  ;;  %v898_v42 = vsel %vm896_vm0, 4294967295, %v3827_v41 }
  0x29   :  { %3277 = vmatpush3.bf16.msra.mxu1 %v3745_v43  ;;  %3250 = vmatprep.subr.bf16.mxu0 %v3746_v44  ;;  %v3811_v43 = vld [vmem:[%s4485_s2 + $0x280] sm:$0xff]   ;;  %v3815_v44 = vld [vmem:[%s4485_s2 + $0x2c8] sm:$0x1f]  }
  0x2a   :  { %3278 = vmatprep.subr.bf16.mxu1 %v3747_v45  ;;  %v899_v45 = vsel %vm897_vm1, %v898_v42, 0 }
  0x2b   :  { %944 = vmatmul.mubr.bf16.gmra.mxu0 %v3762_v58 }
  0x2c   :  { %3251 = vmatpush3.bf16.msra.mxu0 %v3748_v46  ;;  %993 = vmatmul.mubr.bf16.gmra.mxu1 %v3763_v59  ;;  %v3812_v46 = vld [vmem:[%s4486_s1 + $0x20] ss:$48 sps:$4 sm:$0xff]   ;;  %v4225_v59 = vsel %vm1204_vm3, %v25_v57, 0 }
  0x2d   :  { %3279 = vmatpush3.bf16.msra.mxu1 %v3749_v47  ;;  %3252 = vmatprep.subr.bf16.mxu0 %v3750_v48  ;;  %v3817_v47 = vld [vmem:[%s4486_s1 + $0x84] ss:$48 sps:$4 sm:$0xff]   ;;  %v3821_v48 = vld [vmem:[%s4486_s1 + $0x2c] ss:$48 sps:$4 sm:$0xff]  }
  0x2e   :  { %3280 = vmatprep.subr.bf16.mxu1 %v3751_v49  ;;  %1033 = vmatprep.mubr.bf16.mxu0 %v3778_v9  ;;  %v901_v49 = vand.u32 %v3815_v44, %v899_v45 }
  0x2f   :  { %1082 = vmatprep.mubr.bf16.mxu1 %v3781_v11 }
  0x30   :  { %3253 = vmatpush3.bf16.msra.mxu0 %v3752_v50  ;;  %v3816_v50 = vld [vmem:[%s4485_s2 + $0x2c0] sm:$0xff]  }
  0x31   :  { %3281 = vmatpush3.bf16.msra.mxu1 %v3753_v51  ;;  %3254 = vmatprep.subr.bf16.mxu0 %v3754_v52  ;;  %v3822_v51 = vld [vmem:[%s4486_s1 + $0x80] ss:$48 sps:$4 sm:$0xff]   ;;  %v3819_v52 = vld [vmem:[%s4486_s1 + $0x28] ss:$48 sps:$4 sm:$0xff]  }
  0x32   :  { %3282 = vmatprep.subr.bf16.mxu1 %v3755_v53  ;;  %v3823_v53 = vld [vmem:[%s4486_s1 + $0x8c] ss:$48 sps:$4 sm:$0xff]  }
  0x34   :  { %3255 = vmatpush3.bf16.msra.mxu0 %v3756_v54  ;;  %v3825_v54 = vld [vmem:[%s4486_s1 + $0x88] ss:$48 sps:$4 sm:$0xff]  }
  0x35   :  { %3283 = vmatpush3.bf16.msra.mxu1 %v3757_v55  ;;  %3256 = vmatprep.subr.bf16.mxu0 %v3764_v60  ;;  %v24_v55 = vld [vmem:[%s4487_s0] sm:$0xff] }
  0x36   :  { %3284 = vmatprep.subr.bf16.mxu1 %v3765_v61  ;;  %v1206_v56 = vsel %vm1204_vm3, %v24_v55, 0  ;;  %v26_v61 = vld [vmem:[%s4487_s0 + $0x10] sm:$0xff] }
  0x37   :  { %v4223_v58 = vand.u32 4294901760, %v1206_v56 }
  0x38   :  { %3257 = vmatpush3.bf16.msra.mxu0 %v3766_v62 }
  0x39   :  { %3285 = vmatpush3.bf16.msra.mxu1 %v3767_v63  ;;  %3258 = vmatprep.subr.bf16.mxu0 %v3768_v0  ;;  %v4228_v60 = vsub.f32 %v1206_v56, %v4223_v58  ;;  %v4237_v63 = vsel %vm1204_vm3, %v26_v61, 0  ;;  %v27_v0 = vld [vmem:[%s4487_s0 + $0x18] sm:$0xff] }
  0x3a   :  { %3286 = vmatprep.subr.bf16.mxu1 %v3769_v1 }
  0x3b   :  { %v4234_v62 = vand.u32 4294901760, %v4228_v60 }
  0x3c   :  { %3259 = vmatpush3.bf16.msra.mxu0 %v3770_v2  ;;  %v4244_v2 = vsel %vm1204_vm3, %v27_v0, 0 }
  0x3d   :  { %3287 = vmatpush3.bf16.msra.mxu1 %v3771_v3  ;;  %3260 = vmatprep.subr.bf16.mxu0 %v3772_v4  ;;  %v1289_v1 = vsub.f32 %v4228_v60, %v4234_v62 }
  0x3e   :  { %3288 = vmatprep.subr.bf16.mxu1 %v3773_v5 }
  0x3f   :  { %v4246_v3 = vand.u32 4294901760, %v1289_v1 }
  0x40   :  { %3261 = vmatpush3.bf16.msra.mxu0 %v3774_v6 }
  0x41   :  { %3289 = vmatpush3.bf16.msra.mxu1 %v3775_v7  ;;  %3302 = vmatprep.subr.bf16.mxu0 %v3782_v12 }
  0x42   :  { %1148 = vmatprep.subr.bf16.mxu1 %v3826_v13 }
  0x43   :  { %1034 = vmatmul.mubr.bf16.vlgmr.msra.gmra.mxu0 %v3776_v8 }
  0x44   :  { %1083 = vmatmul.mubr.bf16.vlgmr.msra.gmra.mxu1 %v3779_v10  ;;  %3303 = vmatpush3.bf16.msra.mxu0 %v3783_v14 }
  0x45   :  { %1149 = vmatpush1.bf16.msra.mxu1 %v3784_v15  ;;  %3304 = vmatprep.subr.bf16.mxu0 %v3785_v16 }
  0x46   :  { %1150 = vmatprep.subr.bf16.mxu1 %v3826_v13  ;;  %1041 = vmatprep.mubr.bf16.mxu0 %v3788_v19 }
  0x47   :  { %1090 = vmatprep.mubr.bf16.mxu1 %v3792_v22 }
  0x48   :  { %3305 = vmatpush3.bf16.msra.mxu0 %v3786_v17 }
  0x49   :  { %1151 = vmatpush1.bf16.msra.mxu1 %v3787_v18  ;;  %3306 = vmatprep.subr.bf16.mxu0 %v3791_v21 }
  0x4a   :  { %1152 = vmatprep.subr.bf16.mxu1 %v3826_v13 }
  0x4b   :  { %1042 = vmatmul.mubr.bf16.gmra.mxu0 %v3790_v20 }
  0x4c   :  { %3307 = vmatpush3.bf16.msra.mxu0 %v3794_v23  ;;  %1091 = vmatmul.mubr.bf16.gmra.mxu1 %v3796_v25 }
  0x4d   :  { %1153 = vmatpush1.bf16.msra.mxu1 %v3795_v24  ;;  %3308 = vmatprep.subr.bf16.mxu0 %v3797_v26 }
  0x4e   :  { %1154 = vmatprep.subr.bf16.mxu1 %v3826_v13  ;;  %1131 = vmatprep.mubr.bf16.mxu0 %v3814_v40 }
  0x4f   :  { %3186 = vmatprep.mubr.msk.bf16.mxu1 %vm889_vm2, %v3821_v48 }
  0x50   :  { %3309 = vmatpush3.bf16.msra.mxu0 %v3798_v27 }
  0x51   :  { %1155 = vmatpush1.bf16.msra.mxu1 %v3799_v28  ;;  %3310 = vmatprep.subr.bf16.mxu0 %v3800_v29 }
  0x52   :  { %1156 = vmatprep.subr.bf16.mxu1 %v3826_v13 }
  0x54   :  { %3311 = vmatpush3.bf16.msra.mxu0 %v3801_v30 }
  0x55   :  { %1157 = vmatpush1.bf16.msra.mxu1 %v3802_v31  ;;  %3312 = vmatprep.subr.bf16.mxu0 %v3803_v32 }
  0x56   :  { %1158 = vmatprep.subr.bf16.mxu1 %v3826_v13 }
  0x58   :  { %3313 = vmatpush3.bf16.msra.mxu0 %v3804_v33 }
  0x59   :  { %1159 = vmatpush1.bf16.msra.mxu1 %v3805_v34  ;;  %3314 = vmatprep.subr.bf16.mxu0 %v3806_v35 }
  0x5a   :  { %1160 = vmatprep.subr.bf16.mxu1 %v3826_v13 }
  0x5c   :  { %3315 = vmatpush3.bf16.msra.mxu0 %v3807_v36 }
  0x5d   :  { %1161 = vmatpush1.bf16.msra.mxu1 %v3808_v37  ;;  %3316 = vmatprep.subr.bf16.mxu0 %v3809_v38 }
  0x5e   :  { %1162 = vmatprep.subr.bf16.mxu1 %v3826_v13 }
  0x60   :  { %3317 = vmatpush3.bf16.msra.mxu0 %v3810_v39 }
  0x61   :  { %1163 = vmatpush1.bf16.msra.mxu1 %v3811_v43 }
  0x62   :  { %1176 = vmatprep.subr.bf16.mxu1 %v3826_v13 }
  0x63   :  { %1132 = vmatmul.mubr.bf16.vlgmr.msra.gmra.mxu0 %v3812_v46 }
  0x64   :  { %1139 = vmatprep.mubr.bf16.mxu0 %v3817_v47 }
  0x65   :  { %1177 = vmatpush2.bf16.msra.mxu1 %v901_v49 }
  0x66   :  { %1178 = vmatprep.subr.bf16.mxu1 %v3826_v13 }
  0x69   :  { %1179 = vmatpush2.bf16.msra.mxu1 %v3816_v50 }
  0x6b   :  { %1140 = vmatmul.mubr.bf16.gmra.mxu0 %v3822_v51 }
  0x6c   :  { %1181 = vmatmul.mubr.bf16.vlgmr.msra.gmra.mxu1 %v3819_v52  ;;  %3470 = vmatprep.mubr.f32.mxu0 %v4246_v3 }
  0x6d   :  { %3187 = vmatprep.mubr.msk.bf16.mxu1 %vm889_vm2, %v3823_v53 }
  0x74   :  { %1189 = vmatmul.mubr.bf16.gmra.mxu1 %v3825_v54 }
  0x75   :  { %3498 = vmatprep.mubr.f32.mxu1 %v4228_v60 }
  0xe3   :  { %v3206_v4 = vpop.f32.mrf.mxu0 }
  0xe4   :  { %v3234_v7 = vpop.f32.mrf.mxu1 }
  0xe5   :  { %v3207_v5 = vpop.f32.mrf.mxu0 }
  0xe6   :  { %v3235_v10 = vpop.f32.mrf.mxu1  ;;  %v3208_v43 = vadd.f32 %v3207_v5, %v3206_v4 }
  0xe7   :  { %v3209_v6 = vpop.f32.mrf.mxu0  ;;  %v3236_v44 = vadd.f32 %v3235_v10, %v3234_v7 }
  0xe8   :  { %v3237_v12 = vpop.f32.mrf.mxu1 }
  0xe9   :  { %v3210_v8 = vpop.f32.mrf.mxu0  ;;  %v987_v56 = vadd.f32 %v3236_v44, %v3208_v43 }
  0xea   :  { %v3238_v14 = vpop.f32.mrf.mxu1  ;;  %v3211_v36 = vadd.f32 %v3210_v8, %v3209_v6 }
  0xeb   :  { %v3212_v9 = vpop.f32.mrf.mxu0  ;;  %v3239_v37 = vadd.f32 %v3238_v14, %v3237_v12  ;;  %v4250_v14 = vand.u32 4294901760, %v4225_v59 }
  0xec   :  { %v3240_v15 = vpop.f32.mrf.mxu1 }
  0xed   :  { %v3213_v11 = vpop.f32.mrf.mxu0  ;;  %v990_v47 = vadd.f32 %v3239_v37, %v3211_v36 }
  0xee   :  { %v3241_v18 = vpop.f32.mrf.mxu1  ;;  %v3214_v39 = vadd.f32 %v3213_v11, %v3212_v9 }
  0xef   :  { %v3215_v13 = vpop.f32.mrf.mxu0  ;;  %v3242_v40 = vadd.f32 %v3241_v18, %v3240_v15 }
  0xf0   :  { %v3243_v20 = vpop.f32.mrf.mxu1 }
  0xf1   :  { %v3216_v16 = vpop.f32.mrf.mxu0  ;;  %v995_v49 = vadd.f32 %v3242_v40, %v3214_v39 }
  0xf2   :  { %v3244_v22 = vpop.f32.mrf.mxu1  ;;  %v3217_v50 = vadd.f32 %v3216_v16, %v3215_v13 }
  0xf3   :  { %v3245_v51 = vadd.f32 %v3244_v22, %v3243_v20 }
  0xf5   :  { %v998_v4 = vadd.f32 %v3245_v51, %v3217_v50 }
 0x103   :  { %v3262_v17 = vpop.f32.mrf.mxu0 }
 0x104   :  { %v3290_v23 = vpop.f32.mrf.mxu1 }
 0x105   :  { %v3263_v19 = vpop.f32.mrf.mxu0 }
 0x106   :  { %v3291_v25 = vpop.f32.mrf.mxu1  ;;  %v3264_v52 = vadd.f32 %v3263_v19, %v3262_v17 }
 0x107   :  { %v3265_v21 = vpop.f32.mrf.mxu0  ;;  %v3292_v11 = vadd.f32 %v3291_v25, %v3290_v23  ;;  %v4257_v23 = vand.u32 4294901760, %v4237_v63 }
 0x108   :  { %v3293_v27 = vpop.f32.mrf.mxu1  ;;  %v1036_v5 = vadd.f32 %v3264_v52, %v987_v56 }
 0x109   :  { %v3266_v24 = vpop.f32.mrf.mxu0 }
 0x10a   :  { %v3294_v29 = vpop.f32.mrf.mxu1  ;;  %v3267_v42 = vadd.f32 %v3266_v24, %v3265_v21  ;;  %v1085_v21 = vadd.f32 %v3292_v11, %v1036_v5 }
 0x10b   :  { %v3268_v26 = vpop.f32.mrf.mxu0  ;;  %v3295_v6 = vadd.f32 %v3294_v29, %v3293_v27 }
 0x10c   :  { %v3296_v31 = vpop.f32.mrf.mxu1  ;;  %v1039_v54 = vadd.f32 %v3267_v42, %v990_v47 }
 0x10d   :  { %v3269_v28 = vpop.f32.mrf.mxu0 }
 0x10e   :  { %v3297_v33 = vpop.f32.mrf.mxu1  ;;  %v3270_v45 = vadd.f32 %v3269_v28, %v3268_v26  ;;  %v1088_v12 = vadd.f32 %v3295_v6, %v1039_v54  ;;  %v4254_v28 = vsub.f32 %v4225_v59, %v4250_v14  ;;  %v4266_v59 = vsub.f32 %v4237_v63, %v4257_v23 }
 0x10f   :  { %v3271_v30 = vpop.f32.mrf.mxu0  ;;  %v3298_v61 = vadd.f32 %v3297_v33, %v3296_v31  ;;  %v4260_v33 = vand.u32 4294901760, %v4244_v2 }
 0x110   :  { %v3299_v38 = vpop.f32.mrf.mxu1  ;;  %v1044_v57 = vadd.f32 %v3270_v45, %v995_v49  ;;  %v4283_v63 = vand.u32 4294901760, %v4266_v59 }
 0x111   :  { %v3272_v32 = vpop.f32.mrf.mxu0  ;;  %v4276_v43 = vsub.f32 %v4244_v2, %v4260_v33 }
 0x112   :  { %v3300_v48 = vpop.f32.mrf.mxu1  ;;  %v3273_v0 = vadd.f32 %v3272_v32, %v3271_v30  ;;  %v1093_v15 = vadd.f32 %v3298_v61, %v1044_v57  ;;  %v1309_v52 = vsub.f32 %v4266_v59, %v4283_v63 }
 0x113   :  { %v3301_v17 = vadd.f32 %v3300_v48, %v3299_v38  ;;  %v4292_v2 = vand.u32 4294901760, %v4276_v43 }
 0x114   :  { %v1047_v16 = vadd.f32 %v3273_v0, %v998_v4 }
 0x115   :  { %v1319_v57 = vsub.f32 %v4276_v43, %v4292_v2 }
 0x116   :  { %v1096_v25 = vadd.f32 %v3301_v17, %v1047_v16 }
 0x117   :  { %v4310_v4 = vand.u32 4294901760, %v1319_v57 }
 0x123   :  { %v3318_v34 = vpop.f32.mrf.mxu0 }
 0x125   :  { %v3319_v35 = vpop.f32.mrf.mxu0 }
 0x126   :  { %v3320_v18 = vadd.f32 %v3319_v35, %v3318_v34 }
 0x127   :  { %v3321_v41 = vpop.f32.mrf.mxu0 }
 0x128   :  { %v1134_v29 = vadd.f32 %v3320_v18, %v1085_v21 }
 0x129   :  { %v3322_v46 = vpop.f32.mrf.mxu0 }
 0x12a   :  { %v3323_v7 = vadd.f32 %v3322_v46, %v3321_v41  ;;  %v4272_v41 = vand.u32 4294901760, %v4254_v28 }
 0x12b   :  { %v3324_v53 = vpop.f32.mrf.mxu0 }
 0x12c   :  { %v1182_v55 = vpop.f32.mrf.mxu1  ;;  %v1137_v22 = vadd.f32 %v3323_v7, %v1088_v12  ;;  %v1299_v48 = vsub.f32 %v4254_v28, %v4272_v41  ;;  %v1835_v12 = vld [vmem:[%s4488_s4] sm:$0xff] }
 0x12d   :  { %v3325_v1 = vpop.f32.mrf.mxu0  ;;  %v1183_v34 = vadd.f32 %v1182_v55, %v1134_v29 }
 0x12e   :  { %v1184_v8 = vpop.f32.mrf.mxu1  ;;  %v3326_v9 = vadd.f32 %v3325_v1, %v3324_v53  ;;  %v4300_v53 = vand.u32 4294901760, %v1299_v48  ;;  %v4307_v1 = vand.u32 4294901760, %v1309_v52 }
 0x12f   :  { %v3327_v10 = vpop.f32.mrf.mxu0  ;;  %v4278_v44 = vand.u32 4294901760, %v1183_v34 }
 0x130   :  { %v1185_v13 = vpop.f32.mrf.mxu1  ;;  %v1142_v26 = vadd.f32 %v3326_v9, %v1093_v15  ;;  %v4368_v15 = vand.u32 4294901760, %v1835_v12 }
 0x131   :  { %v3328_v19 = vpop.f32.mrf.mxu0  ;;  %v1186_v30 = vadd.f32 %v1185_v13, %v1137_v22  ;;  %v1373_v50 = vsub.f32 %v1183_v34, %v4278_v44 }
 0x132   :  { %v1187_v20 = vpop.f32.mrf.mxu1  ;;  %v3329_v24 = vadd.f32 %v3328_v19, %v3327_v10  ;;  %v1836_v10 = vld [vmem:[%s4488_s4 + $0x8] sm:$0xff]  ;;  %v4376_v17 = vsub.f32 %v1835_v12, %v4368_v15 }
 0x133   :  { %v4268_v38 = vand.u32 4294901760, %v1186_v30  ;;  %v1374_v0 = vand.u32 4294901760, %v1373_v50  ;;  %v4360_v11 = vand.u32 4294901760, %v1836_v10 }
 0x134   :  { %v1190_v27 = vpop.f32.mrf.mxu1  ;;  %v1145_v36 = vadd.f32 %v3329_v24, %v1096_v25  ;;  %v4383_v19 = vand.u32 4294901760, %v4376_v17 }
 0x135   :  { %v1191_v31 = vadd.f32 %v1190_v27, %v1142_v26  ;;  %v1366_v46 = vsub.f32 %v1186_v30, %v4268_v38  ;;  %v1375_v5 = vsub.f32 %v1373_v50, %v1374_v0  ;;  %v4366_v13 = vsub.f32 %v1836_v10, %v4360_v11 }
 0x136   :  { %v1192_v32 = vpop.f32.mrf.mxu1  ;;  %v1996_v21 = vsub.f32 %v4376_v17, %v4383_v19 }
 0x137   :  { %v4262_v35 = vand.u32 4294901760, %v1191_v31  ;;  %v1367_v56 = vand.u32 4294901760, %v1366_v46  ;;  %v1376_v9 = vand.u32 4294901760, %v1375_v5  ;;  %v4373_v16 = vand.u32 4294901760, %v4366_v13 }
 0x138   :  { %v1193_v37 = vpop.f32.mrf.mxu1  ;;  %v1997_v22 = vand.u32 4294901760, %v1996_v21 }
 0x139   :  { %v1359_v39 = vsub.f32 %v1191_v31, %v4262_v35  ;;  %v1194_v40 = vadd.f32 %v1193_v37, %v1145_v36  ;;  %v1368_v8 = vsub.f32 %v1366_v46, %v1367_v56  ;;  %v1989_v18 = vsub.f32 %v4366_v13, %v4373_v16  ;;  %v3188_v36 = vld [vmem:[%s4489_s3] ss:$0 sm:$0xff] }
 0x13a   :  { %v1195_v42 = vpop.f32.mrf.mxu1 }
 0x13b   :  { %v4280_v45 = vand.u32 4294901760, %v1194_v40  ;;  %v1360_v49 = vand.u32 4294901760, %v1359_v39  ;;  %v1369_v7 = vand.u32 4294901760, %v1368_v8  ;;  %v1990_v20 = vand.u32 4294901760, %v1989_v18 }
 0x13d   :  { %v1352_v47 = vsub.f32 %v1194_v40, %v4280_v45  ;;  %3462 = vmatprep.subr.mxu0 %v4280_v45  ;;  %v1361_v55 = vsub.f32 %v1359_v39, %v1360_v49 }
 0x13e   :  { %3463 = vmatpush3.msra.mxu0 %v4280_v45 }
 0x13f   :  { %3464 = vmatprep.subr.mxu0 %v4262_v35  ;;  %3490 = vmatprep.subr.mxu1 %v1352_v47  ;;  %v1353_v51 = vand.u32 4294901760, %v1352_v47  ;;  %v1362_v6 = vand.u32 4294901760, %v1361_v55 }
 0x140   :  { %3465 = vmatpush3.msra.mxu0 %v4262_v35  ;;  %3491 = vmatpush3.msra.mxu1 %v1352_v47 }
 0x141   :  { %3466 = vmatprep.subr.mxu0 %v4268_v38  ;;  %3492 = vmatprep.subr.mxu1 %v1359_v39  ;;  %v1354_v54 = vsub.f32 %v1352_v47, %v1353_v51 }
 0x142   :  { %3467 = vmatpush3.msra.mxu0 %v4268_v38  ;;  %3493 = vmatpush3.msra.mxu1 %v1359_v39 }
 0x143   :  { %3468 = vmatprep.subr.mxu0 %v4278_v44  ;;  %3494 = vmatprep.subr.mxu1 %v1366_v46  ;;  %v1355_v61 = vand.u32 4294901760, %v1354_v54 }
 0x144   :  { %3469 = vmatpush3.msra.mxu0 %v4278_v44  ;;  %3495 = vmatpush3.msra.mxu1 %v1366_v46 }
 0x145   :  { %3471 = vmatmul.mubr.f32.vlgmr.msra.gmra.mxu0 %v4300_v53  ;;  %3476 = vmatprep.subr.mxu0 %v1355_v61 }
 0x146   :  { %3496 = vmatprep.subr.mxu1 %v1373_v50  ;;  %3477 = vmatpush3.msra.mxu0 %v1355_v61 }
 0x147   :  { %3497 = vmatpush3.msra.mxu1 %v1373_v50  ;;  %3478 = vmatprep.subr.mxu0 %v1362_v6 }
 0x148   :  { %3518 = vmatprep.subr.mxu1 %v1353_v51  ;;  %3473 = vmatprep.mubr.f32.mxu0 %v4307_v1 }
 0x149   :  { %3479 = vmatpush3.msra.mxu0 %v1362_v6  ;;  %3499 = vmatmul.mubr.f32.vlgmr.msra.gmra.mxu1 %v4254_v28 }
 0x14a   :  { %3519 = vmatpush3.msra.mxu1 %v1353_v51  ;;  %3474 = vmatmul.mubr.f32.gmra.mxu0 %v4310_v4 }
 0x14b   :  { %3480 = vmatprep.subr.mxu0 %v1369_v7  ;;  %3520 = vmatprep.subr.mxu1 %v1360_v49 }
 0x14c   :  { %3481 = vmatpush3.msra.mxu0 %v1369_v7  ;;  %3521 = vmatpush3.msra.mxu1 %v1360_v49 }
 0x14d   :  { %3482 = vmatprep.subr.mxu0 %v1376_v9  ;;  %3501 = vmatprep.mubr.f32.mxu1 %v4266_v59 }
 0x14e   :  { %3522 = vmatprep.subr.mxu1 %v1367_v56  ;;  %3483 = vmatpush3.msra.mxu0 %v1376_v9 }
 0x14f   :  { %3484 = vmatprep.mubr.f32.mxu0 %v4223_v58  ;;  %3502 = vmatmul.mubr.f32.gmra.mxu1 %v4276_v43 }
 0x150   :  { %3523 = vmatpush3.msra.mxu1 %v1367_v56  ;;  %3485 = vmatmul.mubr.f32.vlgmr.msra.gmra.mxu0 %v4250_v14 }
 0x151   :  { %3504 = vmatprep.subr.mxu0 %v4280_v45  ;;  %3524 = vmatprep.subr.mxu1 %v1374_v0 }
 0x152   :  { %3505 = vmatpush3.msra.mxu0 %v4280_v45  ;;  %3525 = vmatpush3.msra.mxu1 %v1374_v0 }
 0x153   :  { %3506 = vmatprep.subr.mxu0 %v4262_v35  ;;  %3526 = vmatprep.mubr.f32.mxu1 %v4223_v58 }
 0x154   :  { %3690 = vmatprep.subr.mxu1 %v4280_v45  ;;  %3487 = vmatprep.mubr.f32.mxu0 %v4257_v23 }
 0x155   :  { %3507 = vmatpush3.msra.mxu0 %v4262_v35  ;;  %3527 = vmatmul.mubr.f32.vlgmr.msra.gmra.mxu1 %v4250_v14 }
 0x156   :  { %3694 = vmatpush3.msra.mxu1 %v4280_v45  ;;  %3488 = vmatmul.mubr.f32.gmra.mxu0 %v4260_v33 }
 0x157   :  { %3508 = vmatprep.subr.mxu0 %v4268_v38  ;;  %3691 = vmatprep.subr.mxu1 %v4262_v35 }
 0x158   :  { %3509 = vmatpush3.msra.mxu0 %v4268_v38  ;;  %3695 = vmatpush3.msra.mxu1 %v4262_v35 }
 0x159   :  { %3510 = vmatprep.subr.mxu0 %v4278_v44  ;;  %3692 = vmatprep.subr.mxu1 %v4268_v38 }
 0x15a   :  { %3511 = vmatpush3.msra.mxu0 %v4278_v44  ;;  %3512 = vmatprep.mubr.f32.mxu0 %v4234_v62 }
 0x15b   :  { %3696 = vmatpush3.msra.mxu1 %v4268_v38  ;;  %3513 = vmatmul.mubr.f32.vlgmr.msra.gmra.mxu0 %v4272_v41 }
 0x15c   :  { %3532 = vmatprep.subr.mxu0 %v4280_v45  ;;  %3693 = vmatprep.subr.mxu1 %v4278_v44 }
 0x15d   :  { %3533 = vmatpush3.msra.mxu0 %v4280_v45  ;;  %3697 = vmatpush3.msra.mxu1 %v4278_v44 }
 0x15e   :  { %3534 = vmatprep.subr.mxu0 %v4262_v35  ;;  %3515 = vmatprep.mubr.f32.mxu0 %v4283_v63 }
 0x15f   :  { %3529 = vmatprep.mubr.f32.mxu1 %v4257_v23  ;;  %3535 = vmatpush3.msra.mxu0 %v4262_v35 }
 0x160   :  { %3516 = vmatmul.mubr.f32.gmra.mxu0 %v4292_v2  ;;  %3530 = vmatmul.mubr.f32.gmra.mxu1 %v4260_v33 }
 0x161   :  { %3536 = vmatprep.subr.mxu0 %v4268_v38  ;;  %3540 = vmatprep.mubr.f32.mxu0 %v4223_v58 }
 0x162   :  { %3537 = vmatpush3.msra.mxu0 %v4268_v38  ;;  %3543 = vmatprep.mubr.f32.mxu1 %v4257_v23 }
 0x163   :  { %3538 = vmatprep.subr.mxu0 %v4278_v44  ;;  %3546 = vmatprep.subr.mxu1 %v4360_v11 }
 0x164   :  { %3539 = vmatpush3.msra.mxu0 %v4278_v44  ;;  %3544 = vmatmul.mubr.f32.vlgmr.msra.gmra.mxu1 %v4260_v33 }
 0x165   :  { %3541 = vmatmul.mubr.f32.vlgmr.msra.gmra.mxu0 %v4250_v14  ;;  %3547 = vmatpush3.msra.mxu1 %v4360_v11 }
 0x166   :  { %3548 = vmatprep.subr.mxu1 %v4368_v15  ;;  %3556 = vmatprep.subr.mxu0 %v1990_v20 }
 0x167   :  { %3549 = vmatpush3.msra.mxu1 %v4368_v15  ;;  %3557 = vmatpush3.msra.mxu0 %v1990_v20 }
 0x168   :  { %3566 = vmatprep.subr.mxu1 %v4366_v13  ;;  %3558 = vmatprep.subr.mxu0 %v1997_v22 }
 0x169   :  { %3559 = vmatpush3.msra.mxu0 %v1997_v22 }
 0x16a   :  { %3576 = vmatprep.subr.mxu0 %v4360_v11 }
 0x205   :  { %v3472_v24 = vpop.f32.mrf.mxu0 }
 0x206   :  { %v1303_v38 = vadd.f32 %v3472_v24, %v3188_v36 }
 0x207   :  { %v1292_v26 = vpop.f32.mrf.mxu0 }
 0x208   :  { %v1293_v44 = vadd.f32 %v3188_v36, %v1292_v26 }
 0x209   :  { %v3500_v27 = vpop.f32.mrf.mxu1 }
 0x20a   :  { %v3475_v25 = vpop.f32.mrf.mxu0 }
 0x20b   :  { %v1511_v30 = vpop.f32.mrf.mxu1  ;;  %v1323_v42 = vadd.f32 %v3475_v25, %v3188_v36 }
 0x20c   :  { %v1312_v29 = vpop.f32.mrf.mxu0 }
 0x20d   :  { %v1313_v46 = vadd.f32 %v3188_v36, %v1312_v29 }
 0x20f   :  { %v3503_v32 = vpop.f32.mrf.mxu1 }
 0x210   :  { %v3486_v31 = vpop.f32.mrf.mxu0 }
 0x211   :  { %v1525_v35 = vpop.f32.mrf.mxu1  ;;  %v1420_v45 = vadd.f32 %v3486_v31, %v1303_v38 }
 0x212   :  { %v1413_v34 = vpop.f32.mrf.mxu0 }
 0x213   :  { %v1414_v49 = vadd.f32 %v1413_v34, %v1293_v44  ;;  %v1519_v54 = vadd.f32 %v3500_v27, %v1420_v45 }
 0x215   :  { %v3528_v40 = vpop.f32.mrf.mxu1  ;;  %v1512_v56 = vadd.f32 %v1511_v30, %v1414_v49 }
 0x216   :  { %v3489_v37 = vpop.f32.mrf.mxu0 }
 0x217   :  { %v1432_v47 = vadd.f32 %v3489_v37, %v1323_v42  ;;  %v1716_v50 = vpop.f32.mrf.mxu1 }
 0x218   :  { %v1425_v39 = vpop.f32.mrf.mxu0 }
 0x219   :  { %v1426_v51 = vadd.f32 %v1425_v39, %v1313_v46  ;;  %v1533_v55 = vadd.f32 %v3503_v32, %v1432_v47 }
 0x21b   :  { %v3514_v48 = vpop.f32.mrf.mxu0  ;;  %v1526_v6 = vadd.f32 %v1525_v35, %v1426_v51 }
 0x21c   :  { %v1618_v57 = vadd.f32 %v3514_v48, %v1519_v54 }
 0x21d   :  { %v1609_v52 = vpop.f32.mrf.mxu0 }
 0x21e   :  { %v1610_v5 = vadd.f32 %v1609_v52, %v1512_v56  ;;  %v1723_v18 = vadd.f32 %v3528_v40, %v1618_v57 }
 0x220   :  { %v3517_v61 = vpop.f32.mrf.mxu0  ;;  %v3531_v0 = vpop.f32.mrf.mxu1  ;;  %v1717_v26 = vadd.f32 %v1716_v50, %v1610_v5 }
 0x221   :  { %v1634_v8 = vadd.f32 %v3517_v61, %v1533_v55 }
 0x222   :  { %v1625_v7 = vpop.f32.mrf.mxu0  ;;  %v1728_v9 = vpop.f32.mrf.mxu1 }
 0x223   :  { %v1735_v10 = vadd.f32 %v3531_v0, %v1634_v8  ;;  %v1626_v12 = vadd.f32 %v1625_v7, %v1526_v6 }
 0x224   :  { %v3545_v20 = vpop.f32.mrf.mxu1 }
 0x225   :  { %v1729_v21 = vadd.f32 %v1728_v9, %v1626_v12  ;;  %v3542_v22 = vpop.f32.mrf.mxu0  ;;  %v1828_v24 = vadd.f32 %v3545_v20, %v1735_v10 }
 0x226   :  { %v1816_v25 = vadd.f32 %v3542_v22, %v1723_v18  ;;  %v1821_v27 = vpop.f32.mrf.mxu1 }
 0x227   :  { %v1834_v29 = vmax.f32 %v1828_v24, 0.0  ;;  %v1809_v30 = vpop.f32.mrf.mxu0  ;;  %v1822_v31 = vadd.f32 %v1821_v27, %v1729_v21 }
 0x228   :  { %v1832_v32 = vmax.f32 %v1816_v25, 0.0  ;;  %v1810_v34 = vadd.f32 %v1809_v30, %v1717_v26 }
 0x229   :  { %v1848_v35 = vsel %vm1837_vm4, %v1834_v29, 0  ;;  %v1833_v36 = vmax.f32 %v1822_v31, 0.0 }
 0x22a   :  { %v1842_v37 = vsel %vm1837_vm4, %v1832_v32, 0  ;;  %v1947_v38 = vand.u32 4294901760, %v1848_v35  ;;  %v1831_v39 = vmax.f32 %v1810_v34, 0.0 }
 0x22b   :  { %v1927_v42 = vand.u32 4294901760, %v1842_v37  ;;  %v1845_v40 = vsel %vm1837_vm4, %v1833_v36, 0 }
 0x22c   :  { %v1839_v44 = vsel %vm1837_vm4, %v1831_v39, 0  ;;  %v1937_v45 = vand.u32 4294901760, %v1845_v40  ;;  %v1948_v48 = vsub.f32 %v1848_v35, %v1947_v38 }
 0x22d   :  { %v1928_v46 = vsub.f32 %v1842_v37, %v1927_v42  ;;  %v1917_v47 = vand.u32 4294901760, %v1839_v44 }
 0x22e   :  { %v1938_v49 = vsub.f32 %v1845_v40, %v1937_v45  ;;  %v1949_v56 = vand.u32 4294901760, %v1948_v48 }
 0x22f   :  { %v1929_v50 = vand.u32 4294901760, %v1928_v46  ;;  %v1918_v51 = vsub.f32 %v1839_v44, %v1917_v47  ;;  %3560 = vmatprep.mubr.f32.mxu0 %v1917_v47 }
 0x230   :  { %3561 = vmatmul.mubr.f32.vlgmr.msra.gmra.mxu0 %v1927_v42  ;;  %v1939_v52 = vand.u32 4294901760, %v1938_v49  ;;  %v1950_v8 = vsub.f32 %v1948_v48, %v1949_v56 }
 0x231   :  { %3563 = vmatprep.mubr.f32.mxu0 %v1937_v45  ;;  %3577 = vmatpush3.msra.mxu0 %v4360_v11  ;;  %v1919_v54 = vand.u32 4294901760, %v1918_v51  ;;  %v1930_v55 = vsub.f32 %v1928_v46, %v1929_v50 }
 0x232   :  { %3578 = vmatprep.subr.mxu0 %v4368_v15  ;;  %v1940_v61 = vsub.f32 %v1938_v49, %v1939_v52  ;;  %v1951_v7 = vand.u32 4294901760, %v1950_v8 }
 0x233   :  { %v1920_v57 = vsub.f32 %v1918_v51, %v1919_v54  ;;  %3579 = vmatpush3.msra.mxu0 %v4368_v15  ;;  %v1931_v6 = vand.u32 4294901760, %v1930_v55 }
 0x234   :  { %3564 = vmatmul.mubr.f32.gmra.mxu0 %v1947_v38  ;;  %3596 = vmatprep.subr.mxu0 %v4360_v11  ;;  %v1941_v5 = vand.u32 4294901760, %v1940_v61 }
 0x235   :  { %3580 = vmatprep.mubr.f32.mxu0 %v1919_v54  ;;  %v1921_v0 = vand.u32 4294901760, %v1920_v57 }
 0x237   :  { %3550 = vmatprep.mubr.f32.mxu1 %v1921_v0 }
 0x238   :  { %3551 = vmatmul.mubr.f32.vlgmr.msra.gmra.mxu1 %v1931_v6  ;;  %3581 = vmatmul.mubr.f32.vlgmr.msra.gmra.mxu0 %v1929_v50 }
 0x239   :  { %3553 = vmatprep.mubr.f32.mxu1 %v1941_v5  ;;  %3583 = vmatprep.mubr.f32.mxu0 %v1939_v52 }
 0x23a   :  { %3567 = vmatpush3.msra.mxu1 %v4366_v13  ;;  %3597 = vmatpush3.msra.mxu0 %v4360_v11 }
 0x23b   :  { %3568 = vmatprep.subr.mxu1 %v4376_v17  ;;  %3598 = vmatprep.subr.mxu0 %v4368_v15 }
 0x23c   :  { %3554 = vmatmul.mubr.f32.gmra.mxu1 %v1951_v7  ;;  %3584 = vmatmul.mubr.f32.gmra.mxu0 %v1949_v56 }
 0x23d   :  { %3570 = vmatprep.mubr.f32.mxu1 %v1918_v51  ;;  %3600 = vmatprep.mubr.f32.mxu0 %v1917_v47 }
 0x23e   :  { %3569 = vmatpush3.msra.mxu1 %v4376_v17  ;;  %3599 = vmatpush3.msra.mxu0 %v4368_v15 }
 0x23f   :  { %3586 = vmatprep.subr.mxu1 %v4373_v16 }
 0x240   :  { %3571 = vmatmul.mubr.f32.vlgmr.msra.gmra.mxu1 %v1928_v46  ;;  %3601 = vmatmul.mubr.f32.vlgmr.msra.gmra.mxu0 %v1927_v42 }
 0x241   :  { %3573 = vmatprep.mubr.f32.mxu1 %v1938_v49  ;;  %3603 = vmatprep.mubr.f32.mxu0 %v1937_v45 }
 0x242   :  { %3587 = vmatpush3.msra.mxu1 %v4373_v16 }
 0x243   :  { %3588 = vmatprep.subr.mxu1 %v4383_v19 }
 0x244   :  { %3574 = vmatmul.mubr.f32.gmra.mxu1 %v1948_v48  ;;  %3604 = vmatmul.mubr.f32.gmra.mxu0 %v1947_v38 }
 0x245   :  { %3590 = vmatprep.mubr.f32.mxu1 %v1917_v47  ;;  %3589 = vmatpush3.msra.mxu1 %v4383_v19 }
 0x246   :  { %3628 = vmatprep.mubr.f32.mxu0 %v4223_v58 }
 0x248   :  { %3591 = vmatmul.mubr.f32.vlgmr.msra.gmra.mxu1 %v1927_v42 }
 0x249   :  { %3593 = vmatprep.mubr.f32.mxu1 %v1937_v45 }
 0x24c   :  { %3594 = vmatmul.mubr.f32.gmra.mxu1 %v1947_v38 }
 0x24d   :  { %3614 = vmatprep.mubr.f32.mxu1 %v4246_v3 }
 0x2f0   :  { %v3562_v11 = vpop.f32.mrf.mxu0 }
 0x2f2   :  { %v2034_v13 = vpop.f32.mrf.mxu0 }
 0x2f4   :  { %v3565_v15 = vpop.f32.mrf.mxu0 }
 0x2f6   :  { %v2046_v17 = vpop.f32.mrf.mxu0 }
 0x2f8   :  { %v3552_v9 = vpop.f32.mrf.mxu1  ;;  %v3582_v16 = vpop.f32.mrf.mxu0 }
 0x2f9   :  { %v2041_v24 = vadd.f32 %v3562_v11, %v3552_v9 }
 0x2fa   :  { %v1923_v10 = vpop.f32.mrf.mxu1  ;;  %v2224_v12 = vpop.f32.mrf.mxu0 }
 0x2fb   :  { %v2035_v25 = vadd.f32 %v2034_v13, %v1923_v10 }
 0x2fc   :  { %v3555_v18 = vpop.f32.mrf.mxu1  ;;  %v3585_v20 = vpop.f32.mrf.mxu0 }
 0x2fd   :  { %v2053_v3 = vadd.f32 %v3565_v15, %v3555_v18 }
 0x2fe   :  { %v1943_v21 = vpop.f32.mrf.mxu1  ;;  %v2240_v22 = vpop.f32.mrf.mxu0 }
 0x2ff   :  { %v2047_v34 = vadd.f32 %v2046_v17, %v1943_v21 }
 0x300   :  { %v3572_v19 = vpop.f32.mrf.mxu1  ;;  %v3602_v29 = vpop.f32.mrf.mxu0 }
 0x301   :  { %v2136_v27 = vadd.f32 %v3572_v19, %v2041_v24 }
 0x302   :  { %v2128_v26 = vpop.f32.mrf.mxu1  ;;  %v2416_v37 = vpop.f32.mrf.mxu0 }
 0x303   :  { %v2129_v31 = vadd.f32 %v2128_v26, %v2035_v25  ;;  %v2233_v36 = vadd.f32 %v3582_v16, %v2136_v27 }
 0x304   :  { %v3575_v30 = vpop.f32.mrf.mxu1  ;;  %v3605_v48 = vpop.f32.mrf.mxu0 }
 0x305   :  { %v2150_v35 = vadd.f32 %v3575_v30, %v2053_v3  ;;  %v2225_v40 = vadd.f32 %v2224_v12, %v2129_v31 }
 0x306   :  { %v2142_v32 = vpop.f32.mrf.mxu1  ;;  %v2428_v61 = vpop.f32.mrf.mxu0 }
 0x307   :  { %v2143_v39 = vadd.f32 %v2142_v32, %v2047_v34  ;;  %v2249_v47 = vadd.f32 %v3585_v20, %v2150_v35 }
 0x308   :  { %v3592_v38 = vpop.f32.mrf.mxu1 }
 0x309   :  { %v2332_v42 = vadd.f32 %v3592_v38, %v2233_v36  ;;  %v2241_v52 = vadd.f32 %v2240_v22, %v2143_v39 }
 0x30a   :  { %v2325_v44 = vpop.f32.mrf.mxu1 }
 0x30b   :  { %v2423_v45 = vadd.f32 %v3602_v29, %v2332_v42  ;;  %v2326_v46 = vadd.f32 %v2325_v44, %v2225_v40 }
 0x30c   :  { %v3595_v49 = vpop.f32.mrf.mxu1 }
 0x30d   :  { %v2417_v50 = vadd.f32 %v2416_v37, %v2326_v46  ;;  %v2344_v51 = vadd.f32 %v3595_v49, %v2249_v47  ;;  %v4408_v54 = vand.u32 4294901760, %v2423_v45 }
 0x30e   :  { %v2337_v55 = vpop.f32.mrf.mxu1 }
 0x30f   :  { %v2435_v56 = vadd.f32 %v3605_v48, %v2344_v51  ;;  %v2338_v57 = vadd.f32 %v2337_v55, %v2241_v52  ;;  %v4410_v0 = vand.u32 4294901760, %v2417_v50  ;;  %v2594_v5 = vsub.f32 %v2423_v45, %v4408_v54 }
 0x311   :  { %v4412_v6 = vand.u32 4294901760, %v2435_v56  ;;  %v2429_v8 = vadd.f32 %v2428_v61, %v2338_v57  ;;  %v2601_v13 = vsub.f32 %v2417_v50, %v4410_v0  ;;  %v2595_v9 = vand.u32 4294901760, %v2594_v5 }
 0x313   :  { %v2580_v7 = vsub.f32 %v2435_v56, %v4412_v6  ;;  %v4416_v11 = vand.u32 4294901760, %v2429_v8  ;;  %3606 = vmatprep.subr.mxu1 %v4412_v6  ;;  %v2602_v12 = vand.u32 4294901760, %v2601_v13  ;;  %v2596_v21 = vsub.f32 %v2594_v5, %v2595_v9 }
 0x314   :  { %3607 = vmatpush3.msra.mxu1 %v4412_v6 }
 0x315   :  { %v2587_v15 = vsub.f32 %v2429_v8, %v4416_v11  ;;  %3608 = vmatprep.subr.mxu1 %v4416_v11  ;;  %v2581_v17 = vand.u32 4294901760, %v2580_v7  ;;  %v2603_v19 = vsub.f32 %v2601_v13, %v2602_v12  ;;  %v2597_v24 = vand.u32 4294901760, %v2596_v21 }
 0x316   :  { %3609 = vmatpush3.msra.mxu1 %v4416_v11 }
 0x317   :  { %3610 = vmatprep.subr.mxu1 %v4408_v54  ;;  %v2582_v16 = vsub.f32 %v2580_v7, %v2581_v17  ;;  %v2588_v10 = vand.u32 4294901760, %v2587_v15  ;;  %v2604_v26 = vand.u32 4294901760, %v2603_v19 }
 0x318   :  { %3611 = vmatpush3.msra.mxu1 %v4408_v54 }
 0x319   :  { %3612 = vmatprep.subr.mxu1 %v4410_v0  ;;  %v2583_v18 = vand.u32 4294901760, %v2582_v16  ;;  %v2589_v20 = vsub.f32 %v2587_v15, %v2588_v10 }
 0x31a   :  { %3613 = vmatpush3.msra.mxu1 %v4410_v0 }
 0x31b   :  { %3620 = vmatprep.subr.mxu0 %v2583_v18  ;;  %3634 = vmatprep.subr.mxu1 %v2580_v7  ;;  %v2590_v22 = vand.u32 4294901760, %v2589_v20 }
 0x31c   :  { %3615 = vmatmul.mubr.f32.vlgmr.msra.gmra.mxu1 %v4300_v53  ;;  %3621 = vmatpush3.msra.mxu0 %v2583_v18 }
 0x31d   :  { %3635 = vmatpush3.msra.mxu1 %v2580_v7  ;;  %3622 = vmatprep.subr.mxu0 %v2590_v22 }
 0x31e   :  { %3636 = vmatprep.subr.mxu1 %v2587_v15  ;;  %3623 = vmatpush3.msra.mxu0 %v2590_v22 }
 0x31f   :  { %3637 = vmatpush3.msra.mxu1 %v2587_v15  ;;  %3617 = vmatprep.mubr.f32.mxu1 %v4307_v1 }
 0x320   :  { %3624 = vmatprep.subr.mxu0 %v2597_v24  ;;  %3638 = vmatprep.subr.mxu1 %v2594_v5 }
 0x321   :  { %3618 = vmatmul.mubr.f32.gmra.mxu1 %v4310_v4  ;;  %3625 = vmatpush3.msra.mxu0 %v2597_v24 }
 0x322   :  { %3639 = vmatpush3.msra.mxu1 %v2594_v5  ;;  %3626 = vmatprep.subr.mxu0 %v2604_v26 }
 0x323   :  { %3640 = vmatprep.subr.mxu1 %v2601_v13  ;;  %3627 = vmatpush3.msra.mxu0 %v2604_v26 }
 0x324   :  { %3641 = vmatpush3.msra.mxu1 %v2601_v13  ;;  %3629 = vmatmul.mubr.f32.vlgmr.msra.gmra.mxu0 %v4250_v14 }
 0x325   :  { %3642 = vmatprep.mubr.f32.mxu1 %v4228_v60  ;;  %3648 = vmatprep.subr.mxu0 %v4412_v6 }
 0x326   :  { %3662 = vmatprep.subr.mxu1 %v2581_v17  ;;  %3643 = vmatmul.mubr.f32.vlgmr.msra.gmra.mxu1 %v4254_v28 }
 0x327   :  { %3649 = vmatpush3.msra.mxu0 %v4412_v6  ;;  %3663 = vmatpush3.msra.mxu1 %v2581_v17 }
 0x328   :  { %3650 = vmatprep.subr.mxu0 %v4416_v11  ;;  %3664 = vmatprep.subr.mxu1 %v2588_v10 }
 0x329   :  { %3631 = vmatprep.mubr.f32.mxu0 %v4257_v23  ;;  %3651 = vmatpush3.msra.mxu0 %v4416_v11 }
 0x32a   :  { %3665 = vmatpush3.msra.mxu1 %v2588_v10  ;;  %3632 = vmatmul.mubr.f32.gmra.mxu0 %v4260_v33 }
 0x32b   :  { %3652 = vmatprep.subr.mxu0 %v4408_v54  ;;  %3666 = vmatprep.subr.mxu1 %v2595_v9 }
 0x32c   :  { %3653 = vmatpush3.msra.mxu0 %v4408_v54  ;;  %3667 = vmatpush3.msra.mxu1 %v2595_v9 }
 0x32d   :  { %3654 = vmatprep.subr.mxu0 %v4410_v0  ;;  %3668 = vmatprep.subr.mxu1 %v2602_v12 }
 0x32e   :  { %3655 = vmatpush3.msra.mxu0 %v4410_v0  ;;  %3656 = vmatprep.mubr.f32.mxu0 %v4234_v62 }
 0x32f   :  { %3669 = vmatpush3.msra.mxu1 %v2602_v12  ;;  %3645 = vmatprep.mubr.f32.mxu1 %v4266_v59 }
 0x330   :  { %3657 = vmatmul.mubr.f32.vlgmr.msra.gmra.mxu0 %v4272_v41  ;;  %3676 = vmatprep.subr.mxu0 %v4412_v6 }
 0x331   :  { %3646 = vmatmul.mubr.f32.gmra.mxu1 %v4276_v43  ;;  %3677 = vmatpush3.msra.mxu0 %v4412_v6 }
 0x332   :  { %3678 = vmatprep.subr.mxu0 %v4416_v11  ;;  %3659 = vmatprep.mubr.f32.mxu0 %v4283_v63 }
 0x333   :  { %3679 = vmatpush3.msra.mxu0 %v4416_v11  ;;  %3670 = vmatprep.mubr.f32.mxu1 %v4223_v58 }
 0x334   :  { %3660 = vmatmul.mubr.f32.gmra.mxu0 %v4292_v2  ;;  %3680 = vmatprep.subr.mxu0 %v4408_v54 }
 0x335   :  { %3671 = vmatmul.mubr.f32.vlgmr.msra.gmra.mxu1 %v4250_v14  ;;  %3681 = vmatpush3.msra.mxu0 %v4408_v54 }
 0x336   :  { %3682 = vmatprep.subr.mxu0 %v4410_v0  ;;  %3684 = vmatprep.mubr.f32.mxu0 %v4223_v58  ;;  %v3189_v58 = vld [vmem:[%s4490_s5] ss:$0 sm:$0xff] }
 0x337   :  { %3683 = vmatpush3.msra.mxu0 %v4410_v0  ;;  %3673 = vmatprep.mubr.f32.mxu1 %v4257_v23 }
 0x338   :  { %3685 = vmatmul.mubr.f32.vlgmr.msra.gmra.mxu0 %v4250_v14 }
 0x339   :  { %3674 = vmatmul.mubr.f32.gmra.mxu1 %v4260_v33  ;;  %3687 = vmatprep.mubr.f32.mxu0 %v4257_v23 }
 0x33c   :  { %3688 = vmatmul.mubr.f32.gmra.mxu0 %v4260_v33 }
 0x3dc   :  { %v3616_v60 = vpop.f32.mrf.mxu1 }
 0x3dd   :  { %v2531_v63 = vadd.f32 %v3616_v60, %v3189_v58 }
 0x3de   :  { %v2520_v62 = vpop.f32.mrf.mxu1 }
 0x3df   :  { %v2521_v1 = vadd.f32 %v3189_v58, %v2520_v62 }
 0x3e1   :  { %v3619_v28 = vpop.f32.mrf.mxu1 }
 0x3e2   :  { %v2551_v25 = vadd.f32 %v3619_v28, %v3189_v58 }
 0x3e3   :  { %v2540_v41 = vpop.f32.mrf.mxu1 }
 0x3e4   :  { %v3630_v59 = vpop.f32.mrf.mxu0  ;;  %v2541_v29 = vadd.f32 %v3189_v58, %v2540_v41 }
 0x3e5   :  { %v2648_v4 = vadd.f32 %v3630_v59, %v2531_v63 }
 0x3e6   :  { %v2641_v43 = vpop.f32.mrf.mxu0  ;;  %v3644_v2 = vpop.f32.mrf.mxu1 }
 0x3e7   :  { %v2642_v27 = vadd.f32 %v2641_v43, %v2521_v1  ;;  %v2747_v3 = vadd.f32 %v3644_v2, %v2648_v4 }
 0x3e8   :  { %v2739_v23 = vpop.f32.mrf.mxu1 }
 0x3e9   :  { %v2740_v35 = vadd.f32 %v2739_v23, %v2642_v27 }
 0x3ea   :  { %v3633_v53 = vpop.f32.mrf.mxu0 }
 0x3eb   :  { %v2660_v30 = vadd.f32 %v3633_v53, %v2551_v25 }
 0x3ec   :  { %v2653_v14 = vpop.f32.mrf.mxu0 }
 0x3ed   :  { %v2654_v34 = vadd.f32 %v2653_v14, %v2541_v29 }
 0x3f0   :  { %v3658_v33 = vpop.f32.mrf.mxu0 }
 0x3f1   :  { %v3647_v31 = vpop.f32.mrf.mxu1  ;;  %v2846_v36 = vadd.f32 %v3658_v33, %v2747_v3 }
 0x3f2   :  { %v2837_v32 = vpop.f32.mrf.mxu0  ;;  %v2761_v39 = vadd.f32 %v3647_v31, %v2660_v30 }
 0x3f3   :  { %v2753_v37 = vpop.f32.mrf.mxu1  ;;  %v2838_v42 = vadd.f32 %v2837_v32, %v2740_v35 }
 0x3f4   :  { %v3661_v38 = vpop.f32.mrf.mxu0  ;;  %v2754_v45 = vadd.f32 %v2753_v37, %v2654_v34 }
 0x3f5   :  { %v3672_v40 = vpop.f32.mrf.mxu1  ;;  %v2862_v46 = vadd.f32 %v3661_v38, %v2761_v39 }
 0x3f6   :  { %v2853_v44 = vpop.f32.mrf.mxu0  ;;  %v2951_v47 = vadd.f32 %v3672_v40, %v2846_v36 }
 0x3f7   :  { %v2944_v48 = vpop.f32.mrf.mxu1  ;;  %v2854_v50 = vadd.f32 %v2853_v44, %v2754_v45 }
 0x3f8   :  { %v3686_v49 = vpop.f32.mrf.mxu0  ;;  %v2945_v51 = vadd.f32 %v2944_v48, %v2838_v42 }
 0x3f9   :  { %v3044_v52 = vadd.f32 %v3686_v49, %v2951_v47  ;;  %v3675_v54 = vpop.f32.mrf.mxu1 }
 0x3fa   :  { %v3037_v55 = vpop.f32.mrf.mxu0  ;;  %v2963_v57 = vadd.f32 %v3675_v54, %v2862_v46 }
 0x3fb   :  { %v3060_v56 = vmax.f32 %v3044_v52, 0.0  ;;  %v3038_v61 = vadd.f32 %v3037_v55, %v2945_v51  ;;  %v2956_v0 = vpop.f32.mrf.mxu1 }
 0x3fc   :  { %v3689_v6 = vpop.f32.mrf.mxu0  ;;  %v2957_v5 = vadd.f32 %v2956_v0, %v2854_v50 }
 0x3fd   :  { %3065 = vst.msk [vmem:[%s4491_s6 + $0x8] sm:$0xff] %vm3063_vm5, %v3060_v56  ;;  %v3059_v8 = vmax.f32 %v3038_v61, 0.0  ;;  %v3056_v7 = vadd.f32 %v3689_v6, %v2963_v57 }
 0x3fe   :  { %v3049_v11 = vpop.f32.mrf.mxu0 }
 0x3ff   :  { %3064 = vst.msk [vmem:[%s4491_s6] sm:$0xff] %vm3063_vm5, %v3059_v8  ;;  %v3062_v13 = vmax.f32 %v3056_v7, 0.0  ;;  %v3050_v15 = vadd.f32 %v3049_v11, %v2957_v5 }
 0x401   :  { %3067 = vst.msk [vmem:[%s4491_s6 + $0x18] sm:$0xff] %vm3063_vm5, %v3062_v13  ;;  %v3061_v17 = vmax.f32 %v3050_v15, 0.0 }
 0x403   :  { %3066 = vst.msk [vmem:[%s4491_s6 + $0x10] sm:$0xff] %vm3063_vm5, %v3061_v17 }

</bundles_post_ra>
